<compile_context>
chip_gen: v7x
topology: tpu7x:2x2x1
jax: 0.10.0
libtpu: 0.0.40
codegen_flags: <defaults>
</compile_context>

<pallas_src>
import jax
import jax.numpy as jnp
from jax.experimental import pallas as pl
from jax.experimental.pallas import tpu as pltpu


def lstm_dir_kernel(emb_ref, wih_ref, whh_ref, b_ref,
                    out_ref, hn_ref, cn_ref, xp_scr):
    """Runs one LSTM direction over the whole (padded batch, sequence).

    Grid axis 0: direction (0 = forward, 1 = backward; the backward direction's
    embeddings are already time-reversed by the wrapper, so the kernel always
    walks t = 0..S-1).

      emb_ref : (S*Bp, E)   embedded tokens, time-major rows (row = t*Bp + b), this dir
      wih_ref : (E, 4H)     W_ih^T for this direction
      whh_ref : (H, 4H)     W_hh^T for this direction
      b_ref   : (1, 4H)     b_ih + b_hh for this direction
      out_ref : (S*Bp, H)   per-timestep hidden states (time-major) for this direction
      hn_ref  : (Bp, H)     final hidden state for this direction
      cn_ref  : (Bp, H)     final cell state for this direction
      xp_scr  : (S*Bp, 4H)  VMEM scratch holding the hoisted input projection
    """
    SB, _ = emb_ref.shape
    Bp, H = hn_ref.shape
    S = SB // Bp

    # Hoisted input projection for all timesteps: one big MXU pass + fused biases.
    xp_scr[...] = (
        jnp.dot(emb_ref[...], wih_ref[...], preferred_element_type=jnp.float32)
        + b_ref[...])

    whh = whh_ref[...]                                    # (H, 4H), stays resident

    h = jnp.zeros((Bp, H), jnp.float32)
    c = jnp.zeros((Bp, H), jnp.float32)

    # Fully-unrolled static loop: every slice offset below is a Python int that is
    # a multiple of Bp (>= 8), so all loads/stores are whole, aligned sublane tiles.
    for t in range(S):
        row = t * Bp
        gates = xp_scr[row:row + Bp, :] + jnp.dot(
            h, whh, preferred_element_type=jnp.float32)   # (Bp, 4H)
        # PyTorch gate order: input, forget, cell(g), output
        i_g = jax.nn.sigmoid(gates[:, 0 * H:1 * H])
        f_g = jax.nn.sigmoid(gates[:, 1 * H:2 * H])
        g_g = jnp.tanh(gates[:, 2 * H:3 * H])
        o_g = jax.nn.sigmoid(gates[:, 3 * H:4 * H])
        c = f_g * c + i_g * g_g
        h = o_g * jnp.tanh(c)
        out_ref[row:row + Bp, :] = h.astype(out_ref.dtype)

    hn_ref[...] = h.astype(hn_ref.dtype)
    cn_ref[...] = c.astype(cn_ref.dtype)


def state_proj_kernel(hn_ref, cn_ref, wh1_ref, wh2_ref, bh_ref,
                      wc1_ref, wc2_ref, bc_ref, hid_ref, cell_ref):
    """hidden = cat(h_fwd, h_bwd) @ W_h^T + b_h ; cell analogously.

    The concat over the 2H axis is folded into two half matmuls, so no in-kernel
    lane-concat is needed.
    """
    hid = (jnp.dot(hn_ref[0], wh1_ref[...], preferred_element_type=jnp.float32)
           + jnp.dot(hn_ref[1], wh2_ref[...], preferred_element_type=jnp.float32)
           + bh_ref[...])
    cel = (jnp.dot(cn_ref[0], wc1_ref[...], preferred_element_type=jnp.float32)
           + jnp.dot(cn_ref[1], wc2_ref[...], preferred_element_type=jnp.float32)
           + bc_ref[...])
    hid_ref[...] = hid.astype(hid_ref.dtype)
    cell_ref[...] = cel.astype(cell_ref.dtype)


def lstm_encoder_forward(token_ids, embed_matrix,
                         w_ih, w_hh, b_ih, b_hh,
                         w_hidden, b_hidden, w_cell, b_cell):
    """Forward of LSTMencoder (num_layers=1, bidirectional=True, eval mode).

    token_ids:    (B, S) int32
    embed_matrix: (V, E)
    w_ih: (2, 4H, E), w_hh: (2, 4H, H), b_ih: (2, 4H), b_hh: (2, 4H)   [fwd, bwd]
    w_hidden, w_cell: (H, 2H);  b_hidden, b_cell: (H,)
    returns: output (B, S, 2H), hidden (1, B, H), cell (1, B, H)
    """
    B, S = token_ids.shape
    E = embed_matrix.shape[1]
    H = w_hh.shape[-1]
    dtype = embed_matrix.dtype

    # Pad batch to a sublane multiple so every per-step (Bp, X) slab is whole tiles.
    Bp = max(8, ((B + 7) // 8) * 8)

    # TODO(synk): embedding gather is left to XLA (jnp.take); a Pallas DMA-gather via
    # scalar-prefetched ids is possible but not worthwhile at these sizes.
    emb = jnp.take(embed_matrix, token_ids, axis=0)              # (B, S, E)
    emb = jnp.pad(emb, ((0, Bp - B), (0, 0), (0, 0)))            # (Bp, S, E), pad rows = 0
    # Time-major rows (row = t*Bp + b); backward direction pre-reversed in time so the
    # kernel only ever uses static, forward-walking slices (layout plumbing stays here).
    emb_tm = jnp.transpose(emb, (1, 0, 2))                       # (S, Bp, E)
    emb_fwd = emb_tm.reshape(S * Bp, E)
    emb_bwd = emb_tm[::-1].reshape(S * Bp, E)
    emb_dirs = jnp.stack([emb_fwd, emb_bwd], axis=0)             # (2, S*Bp, E)

    wih_t = jnp.transpose(w_ih, (0, 2, 1))                       # (2, E, 4H)
    whh_t = jnp.transpose(w_hh, (0, 2, 1))                       # (2, H, 4H)
    bias = (b_ih + b_hh)[:, None, :]                             # (2, 1, 4H)

    out_tm, hn, cn = pl.pallas_call(
        lstm_dir_kernel,
        out_shape=(
            jax.ShapeDtypeStruct((2, S * Bp, H), dtype),  # per-direction hidden sequence
            jax.ShapeDtypeStruct((2, Bp, H), dtype),      # final h per direction
            jax.ShapeDtypeStruct((2, Bp, H), dtype),      # final c per direction
        ),
        grid_spec=pltpu.PrefetchScalarGridSpec(
            num_scalar_prefetch=0,
            grid=(2,),                                            # one step per direction
            in_specs=[
                pl.BlockSpec((None, S * Bp, E), lambda d: (d, 0, 0)),  # emb (this dir)
                pl.BlockSpec((None, E, 4 * H), lambda d: (d, 0, 0)),   # W_ih^T (this dir)
                pl.BlockSpec((None, H, 4 * H), lambda d: (d, 0, 0)),   # W_hh^T (this dir)
                pl.BlockSpec((None, 1, 4 * H), lambda d: (d, 0, 0)),   # fused bias (this dir)
            ],
            out_specs=[
                pl.BlockSpec((None, S * Bp, H), lambda d: (d, 0, 0)),
                pl.BlockSpec((None, Bp, H), lambda d: (d, 0, 0)),
                pl.BlockSpec((None, Bp, H), lambda d: (d, 0, 0)),
            ],
            scratch_shapes=[pltpu.VMEM((S * Bp, 4 * H), jnp.float32)],
        ),
        compiler_params=pltpu.CompilerParams(
            dimension_semantics=("parallel",)),   # 2 independent directions
    )(emb_dirs, wih_t, whh_t, bias)

    # Re-assemble PyTorch layouts (wrapper-side layout plumbing only).
    out_dirs = out_tm.reshape(2, S, Bp, H)[:, :, :B, :]          # (2, S, B, H)
    out_f = out_dirs[0]                                          # forward, natural time order
    out_b = out_dirs[1][::-1]                                    # undo the time reversal
    output = jnp.transpose(
        jnp.concatenate([out_f, out_b], axis=-1), (1, 0, 2))     # (B, S, 2H)

    wh1 = w_hidden[:, :H].T                                      # (H, H)
    wh2 = w_hidden[:, H:].T
    wc1 = w_cell[:, :H].T
    wc2 = w_cell[:, H:].T
    hid, cel = pl.pallas_call(
        state_proj_kernel,
        out_shape=(jax.ShapeDtypeStruct((Bp, H), dtype),
                   jax.ShapeDtypeStruct((Bp, H), dtype)),
    )(hn, cn, wh1, wh2, b_hidden.reshape(1, H),
      wc1, wc2, b_cell.reshape(1, H))

    return output, hid[:B][None], cel[:B][None]


if __name__ == "__main__":
    V, E, H = 50, 16, 32      # vocab size, embed_dim, hidden_units
    B, S = 2, 8               # batch, sequence length
    key = jax.random.PRNGKey(0)
    ks = jax.random.split(key, 10)

    token_ids = jax.random.randint(ks[0], (B, S), 0, V).astype(jnp.int32)
    embed_matrix = 0.5 * jax.random.normal(ks[1], (V, E), jnp.float32)
    embed_matrix = embed_matrix.at[0].set(0.0)                   # padding_idx = 0

    # Bidirectional single-layer LSTM params, PyTorch layout & (i, f, g, o) gate order.
    w_ih = 0.3 * jax.random.normal(ks[2], (2, 4 * H, E), jnp.float32)
    w_hh = 0.3 * jax.random.normal(ks[3], (2, 4 * H, H), jnp.float32)
    b_ih = 0.1 * jax.random.normal(ks[4], (2, 4 * H), jnp.float32)
    b_hh = 0.1 * jax.random.normal(ks[5], (2, 4 * H), jnp.float32)
    # nn.Linear(2H, H) for the hidden / cell projections.
    w_hidden = 0.2 * jax.random.normal(ks[6], (H, 2 * H), jnp.float32)
    b_hidden = 0.1 * jax.random.normal(ks[7], (H,), jnp.float32)
    w_cell = 0.2 * jax.random.normal(ks[8], (H, 2 * H), jnp.float32)
    b_cell = 0.1 * jax.random.normal(ks[9], (H,), jnp.float32)

    output, hidden, cell = lstm_encoder_forward(
        token_ids, embed_matrix, w_ih, w_hh, b_ih, b_hh,
        w_hidden, b_hidden, w_cell, b_cell)
    jax.block_until_ready((output, hidden, cell))

    # ---- pure-JAX reference mirroring the PyTorch forward exactly ----
    emb = jnp.take(embed_matrix, token_ids, axis=0)
    hp = jax.lax.Precision.HIGHEST

    def ref_dir(wih, whh, bih, bhh, reverse):
        h = jnp.zeros((B, H), jnp.float32)
        c = jnp.zeros((B, H), jnp.float32)
        outs = [None] * S
        ts = range(S - 1, -1, -1) if reverse else range(S)
        for t in ts:
            g = (jnp.dot(emb[:, t, :], wih.T, precision=hp) + bih
                 + jnp.dot(h, whh.T, precision=hp) + bhh)
            i_g = jax.nn.sigmoid(g[:, 0 * H:1 * H])
            f_g = jax.nn.sigmoid(g[:, 1 * H:2 * H])
            g_g = jnp.tanh(g[:, 2 * H:3 * H])
            o_g = jax.nn.sigmoid(g[:, 3 * H:4 * H])
            c = f_g * c + i_g * g_g
            h = o_g * jnp.tanh(c)
            outs[t] = h
        return jnp.stack(outs, axis=1), h, c

    out_f, hf, cf = ref_dir(w_ih[0], w_hh[0], b_ih[0], b_hh[0], False)
    out_b, hb, cb = ref_dir(w_ih[1], w_hh[1], b_ih[1], b_hh[1], True)
    output_ref = jnp.concatenate([out_f, out_b], axis=-1)
    hidden_ref = (jnp.dot(jnp.concatenate([hf, hb], axis=-1), w_hidden.T,
                          precision=hp) + b_hidden)[None]
    cell_ref = (jnp.dot(jnp.concatenate([cf, cb], axis=-1), w_cell.T,
                        precision=hp) + b_cell)[None]

    assert output.shape == (B, S, 2 * H)
    assert hidden.shape == (1, B, H) and cell.shape == (1, B, H)
    assert jnp.allclose(output, output_ref, atol=5e-3, rtol=5e-3)
    assert jnp.allclose(hidden, hidden_ref, atol=5e-3, rtol=5e-3)
    assert jnp.allclose(cell, cell_ref, atol=5e-3, rtol=5e-3)
    print("KERNEL_OK")
</pallas_src>

<mosaic_0001>
module attributes {stable_mosaic.version = 11 : i64} {
  func.func @lstm_dir_kernel(%arg0: i32, %arg1: memref<1x64x16xf32, #tpu.memory_space<vmem>>, %arg2: memref<1x16x128xf32, #tpu.memory_space<vmem>>, %arg3: memref<1x32x128xf32, #tpu.memory_space<vmem>>, %arg4: memref<1x1x128xf32, #tpu.memory_space<vmem>>, %arg5: memref<1x64x32xf32, #tpu.memory_space<vmem>>, %arg6: memref<1x8x32xf32, #tpu.memory_space<vmem>>, %arg7: memref<1x8x32xf32, #tpu.memory_space<vmem>>, %arg8: memref<64x128xf32, #tpu.memory_space<vmem>>) attributes {dimension_semantics = [#tpu.dimension_semantics<parallel>], iteration_bounds = array<i64: 2>, scalar_prefetch = 0 : i64, scratch_operands = 1 : i64, tpu.core_type = #tpu.core_type<tc>, window_params = [{transform_indices = @transform_0, window_bounds = array<i64: 1, 64, 16>}, {transform_indices = @transform_1, window_bounds = array<i64: 1, 16, 128>}, {transform_indices = @transform_2, window_bounds = array<i64: 1, 32, 128>}, {transform_indices = @transform_3, window_bounds = array<i64: 1, 1, 128>}, {transform_indices = @transform_4, window_bounds = array<i64: 1, 64, 32>}, {transform_indices = @transform_5, window_bounds = array<i64: 1, 8, 32>}, {transform_indices = @transform_6, window_bounds = array<i64: 1, 8, 32>}]} {
    %c0 = arith.constant 0 : index
    %c0_0 = arith.constant 0 : index
    %c0_1 = arith.constant 0 : index
    %0 = vector.load %arg1[%c0, %c0_0, %c0_1] : memref<1x64x16xf32, #tpu.memory_space<vmem>>, vector<1x64x16xf32>
    %1 = vector.shape_cast %0 : vector<1x64x16xf32> to vector<64x16xf32>
    %c0_2 = arith.constant 0 : index
    %c0_3 = arith.constant 0 : index
    %c0_4 = arith.constant 0 : index
    %2 = vector.load %arg2[%c0_2, %c0_3, %c0_4] : memref<1x16x128xf32, #tpu.memory_space<vmem>>, vector<1x16x128xf32>
    %3 = vector.shape_cast %2 : vector<1x16x128xf32> to vector<16x128xf32>
    %cst = arith.constant dense<0.000000e+00> : vector<64x128xf32>
    %4 = tpu.matmul %1, %3, %cst {dimension_numbers = #tpu.dot_dimension_numbers<[1], [0], [0], [1], [0, 0, 1, 1], [], []>} : vector<64x16xf32>, vector<16x128xf32>, vector<64x128xf32> -> vector<64x128xf32>
    %c0_5 = arith.constant 0 : index
    %c0_6 = arith.constant 0 : index
    %c0_7 = arith.constant 0 : index
    %5 = vector.load %arg4[%c0_5, %c0_6, %c0_7] : memref<1x1x128xf32, #tpu.memory_space<vmem>>, vector<1x1x128xf32>
    %6 = vector.shape_cast %5 : vector<1x1x128xf32> to vector<1x128xf32>
    %7 = vector.broadcast %6 : vector<1x128xf32> to vector<64x128xf32>
    %8 = arith.addf %4, %7 : vector<64x128xf32>
    %c0_8 = arith.constant 0 : index
    %c0_9 = arith.constant 0 : index
    %9 = vector.load %arg8[%c0_8, %c0_9] : memref<64x128xf32, #tpu.memory_space<vmem>>, vector<64x128xf32>
    tpu.vector_store %arg8[%c0_8, %c0_9], %8 {strides = array<i32>} : memref<64x128xf32, #tpu.memory_space<vmem>>, vector<64x128xf32>,
    %c0_10 = arith.constant 0 : index
    %c0_11 = arith.constant 0 : index
    %c0_12 = arith.constant 0 : index
    %10 = vector.load %arg3[%c0_10, %c0_11, %c0_12] : memref<1x32x128xf32, #tpu.memory_space<vmem>>, vector<1x32x128xf32>
    %11 = vector.shape_cast %10 : vector<1x32x128xf32> to vector<32x128xf32>
    %cst_13 = arith.constant 0.000000e+00 : f32
    %12 = vector.broadcast %cst_13 : f32 to vector<8x32xf32>
    %cst_14 = arith.constant 0.000000e+00 : f32
    %13 = vector.broadcast %cst_14 : f32 to vector<8x32xf32>
    %c0_15 = arith.constant 0 : index
    %c0_16 = arith.constant 0 : index
    %14 = vector.load %arg8[%c0_15, %c0_16] : memref<64x128xf32, #tpu.memory_space<vmem>>, vector<8x128xf32>
    %cst_17 = arith.constant dense<0.000000e+00> : vector<8x128xf32>
    %15 = tpu.matmul %12, %11, %cst_17 {dimension_numbers = #tpu.dot_dimension_numbers<[1], [0], [0], [1], [0, 0, 1, 1], [], []>} : vector<8x32xf32>, vector<32x128xf32>, vector<8x128xf32> -> vector<8x128xf32>
    %16 = arith.addf %14, %15 : vector<8x128xf32>
    %17 = vector.extract_strided_slice %16 {offsets = [0, 0], sizes = [8, 32], strides = [1, 1]} : vector<8x128xf32> to vector<8x32xf32>
    %18 = arith.negf %17 : vector<8x32xf32>
    %19 = math.exp %18 : vector<8x32xf32>
    %cst_18 = arith.constant 1.000000e+00 : f32
    %20 = vector.broadcast %cst_18 : f32 to vector<8x32xf32>
    %21 = arith.addf %20, %19 : vector<8x32xf32>
    %22 = arith.divf %20, %21 : vector<8x32xf32>
    %23 = vector.extract_strided_slice %16 {offsets = [0, 32], sizes = [8, 32], strides = [1, 1]} : vector<8x128xf32> to vector<8x32xf32>
    %24 = arith.negf %23 : vector<8x32xf32>
    %25 = math.exp %24 : vector<8x32xf32>
    %cst_19 = arith.constant 1.000000e+00 : f32
    %26 = vector.broadcast %cst_19 : f32 to vector<8x32xf32>
    %27 = arith.addf %26, %25 : vector<8x32xf32>
    %28 = arith.divf %26, %27 : vector<8x32xf32>
    %29 = vector.extract_strided_slice %16 {offsets = [0, 64], sizes = [8, 32], strides = [1, 1]} : vector<8x128xf32> to vector<8x32xf32>
    %30 = math.tanh %29 : vector<8x32xf32>
    %31 = vector.extract_strided_slice %16 {offsets = [0, 96], sizes = [8, 32], strides = [1, 1]} : vector<8x128xf32> to vector<8x32xf32>
    %32 = arith.negf %31 : vector<8x32xf32>
    %33 = math.exp %32 : vector<8x32xf32>
    %cst_20 = arith.constant 1.000000e+00 : f32
    %34 = vector.broadcast %cst_20 : f32 to vector<8x32xf32>
    %35 = arith.addf %34, %33 : vector<8x32xf32>
    %36 = arith.divf %34, %35 : vector<8x32xf32>
    %37 = arith.mulf %28, %13 : vector<8x32xf32>
    %38 = arith.mulf %22, %30 : vector<8x32xf32>
    %39 = arith.addf %37, %38 : vector<8x32xf32>
    %40 = math.tanh %39 : vector<8x32xf32>
    %41 = arith.mulf %36, %40 : vector<8x32xf32>
    %c0_21 = arith.constant 0 : index
    %c0_22 = arith.constant 0 : index
    %c0_23 = arith.constant 0 : index
    %42 = vector.load %arg5[%c0_21, %c0_22, %c0_23] : memref<1x64x32xf32, #tpu.memory_space<vmem>>, vector<1x8x32xf32>
    %43 = vector.shape_cast %42 : vector<1x8x32xf32> to vector<8x32xf32>
    %44 = vector.shape_cast %41 : vector<8x32xf32> to vector<1x8x32xf32>
    tpu.vector_store %arg5[%c0_21, %c0_22, %c0_23], %44 {strides = array<i32>} : memref<1x64x32xf32, #tpu.memory_space<vmem>>, vector<1x8x32xf32>,
    %c8 = arith.constant 8 : index
    %c0_24 = arith.constant 0 : index
    %45 = vector.load %arg8[%c8, %c0_24] : memref<64x128xf32, #tpu.memory_space<vmem>>, vector<8x128xf32>
    %cst_25 = arith.constant dense<0.000000e+00> : vector<8x128xf32>
    %46 = tpu.matmul %41, %11, %cst_25 {dimension_numbers = #tpu.dot_dimension_numbers<[1], [0], [0], [1], [0, 0, 1, 1], [], []>} : vector<8x32xf32>, vector<32x128xf32>, vector<8x128xf32> -> vector<8x128xf32>
    %47 = arith.addf %45, %46 : vector<8x128xf32>
    %48 = vector.extract_strided_slice %47 {offsets = [0, 0], sizes = [8, 32], strides = [1, 1]} : vector<8x128xf32> to vector<8x32xf32>
    %49 = arith.negf %48 : vector<8x32xf32>
    %50 = math.exp %49 : vector<8x32xf32>
    %cst_26 = arith.constant 1.000000e+00 : f32
    %51 = vector.broadcast %cst_26 : f32 to vector<8x32xf32>
    %52 = arith.addf %51, %50 : vector<8x32xf32>
    %53 = arith.divf %51, %52 : vector<8x32xf32>
    %54 = vector.extract_strided_slice %47 {offsets = [0, 32], sizes = [8, 32], strides = [1, 1]} : vector<8x128xf32> to vector<8x32xf32>
    %55 = arith.negf %54 : vector<8x32xf32>
    %56 = math.exp %55 : vector<8x32xf32>
    %cst_27 = arith.constant 1.000000e+00 : f32
    %57 = vector.broadcast %cst_27 : f32 to vector<8x32xf32>
    %58 = arith.addf %57, %56 : vector<8x32xf32>
    %59 = arith.divf %57, %58 : vector<8x32xf32>
    %60 = vector.extract_strided_slice %47 {offsets = [0, 64], sizes = [8, 32], strides = [1, 1]} : vector<8x128xf32> to vector<8x32xf32>
    %61 = math.tanh %60 : vector<8x32xf32>
    %62 = vector.extract_strided_slice %47 {offsets = [0, 96], sizes = [8, 32], strides = [1, 1]} : vector<8x128xf32> to vector<8x32xf32>
    %63 = arith.negf %62 : vector<8x32xf32>
    %64 = math.exp %63 : vector<8x32xf32>
    %cst_28 = arith.constant 1.000000e+00 : f32
    %65 = vector.broadcast %cst_28 : f32 to vector<8x32xf32>
    %66 = arith.addf %65, %64 : vector<8x32xf32>
    %67 = arith.divf %65, %66 : vector<8x32xf32>
    %68 = arith.mulf %59, %39 : vector<8x32xf32>
    %69 = arith.mulf %53, %61 : vector<8x32xf32>
    %70 = arith.addf %68, %69 : vector<8x32xf32>
    %71 = math.tanh %70 : vector<8x32xf32>
    %72 = arith.mulf %67, %71 : vector<8x32xf32>
    %c0_29 = arith.constant 0 : index
    %c8_30 = arith.constant 8 : index
    %c0_31 = arith.constant 0 : index
    %73 = vector.load %arg5[%c0_29, %c8_30, %c0_31] : memref<1x64x32xf32, #tpu.memory_space<vmem>>, vector<1x8x32xf32>
    %74 = vector.shape_cast %73 : vector<1x8x32xf32> to vector<8x32xf32>
    %75 = vector.shape_cast %72 : vector<8x32xf32> to vector<1x8x32xf32>
    tpu.vector_store %arg5[%c0_29, %c8_30, %c0_31], %75 {strides = array<i32>} : memref<1x64x32xf32, #tpu.memory_space<vmem>>, vector<1x8x32xf32>,
    %c16 = arith.constant 16 : index
    %c0_32 = arith.constant 0 : index
    %76 = vector.load %arg8[%c16, %c0_32] : memref<64x128xf32, #tpu.memory_space<vmem>>, vector<8x128xf32>
    %cst_33 = arith.constant dense<0.000000e+00> : vector<8x128xf32>
    %77 = tpu.matmul %72, %11, %cst_33 {dimension_numbers = #tpu.dot_dimension_numbers<[1], [0], [0], [1], [0, 0, 1, 1], [], []>} : vector<8x32xf32>, vector<32x128xf32>, vector<8x128xf32> -> vector<8x128xf32>
    %78 = arith.addf %76, %77 : vector<8x128xf32>
    %79 = vector.extract_strided_slice %78 {offsets = [0, 0], sizes = [8, 32], strides = [1, 1]} : vector<8x128xf32> to vector<8x32xf32>
    %80 = arith.negf %79 : vector<8x32xf32>
    %81 = math.exp %80 : vector<8x32xf32>
    %cst_34 = arith.constant 1.000000e+00 : f32
    %82 = vector.broadcast %cst_34 : f32 to vector<8x32xf32>
    %83 = arith.addf %82, %81 : vector<8x32xf32>
    %84 = arith.divf %82, %83 : vector<8x32xf32>
    %85 = vector.extract_strided_slice %78 {offsets = [0, 32], sizes = [8, 32], strides = [1, 1]} : vector<8x128xf32> to vector<8x32xf32>
    %86 = arith.negf %85 : vector<8x32xf32>
    %87 = math.exp %86 : vector<8x32xf32>
    %cst_35 = arith.constant 1.000000e+00 : f32
    %88 = vector.broadcast %cst_35 : f32 to vector<8x32xf32>
    %89 = arith.addf %88, %87 : vector<8x32xf32>
    %90 = arith.divf %88, %89 : vector<8x32xf32>
    %91 = vector.extract_strided_slice %78 {offsets = [0, 64], sizes = [8, 32], strides = [1, 1]} : vector<8x128xf32> to vector<8x32xf32>
    %92 = math.tanh %91 : vector<8x32xf32>
    %93 = vector.extract_strided_slice %78 {offsets = [0, 96], sizes = [8, 32], strides = [1, 1]} : vector<8x128xf32> to vector<8x32xf32>
    %94 = arith.negf %93 : vector<8x32xf32>
    %95 = math.exp %94 : vector<8x32xf32>
    %cst_36 = arith.constant 1.000000e+00 : f32
    %96 = vector.broadcast %cst_36 : f32 to vector<8x32xf32>
    %97 = arith.addf %96, %95 : vector<8x32xf32>
    %98 = arith.divf %96, %97 : vector<8x32xf32>
    %99 = arith.mulf %90, %70 : vector<8x32xf32>
    %100 = arith.mulf %84, %92 : vector<8x32xf32>
    %101 = arith.addf %99, %100 : vector<8x32xf32>
    %102 = math.tanh %101 : vector<8x32xf32>
    %103 = arith.mulf %98, %102 : vector<8x32xf32>
    %c0_37 = arith.constant 0 : index
    %c16_38 = arith.constant 16 : index
    %c0_39 = arith.constant 0 : index
    %104 = vector.load %arg5[%c0_37, %c16_38, %c0_39] : memref<1x64x32xf32, #tpu.memory_space<vmem>>, vector<1x8x32xf32>
    %105 = vector.shape_cast %104 : vector<1x8x32xf32> to vector<8x32xf32>
    %106 = vector.shape_cast %103 : vector<8x32xf32> to vector<1x8x32xf32>
    tpu.vector_store %arg5[%c0_37, %c16_38, %c0_39], %106 {strides = array<i32>} : memref<1x64x32xf32, #tpu.memory_space<vmem>>, vector<1x8x32xf32>,
    %c24 = arith.constant 24 : index
    %c0_40 = arith.constant 0 : index
    %107 = vector.load %arg8[%c24, %c0_40] : memref<64x128xf32, #tpu.memory_space<vmem>>, vector<8x128xf32>
    %cst_41 = arith.constant dense<0.000000e+00> : vector<8x128xf32>
    %108 = tpu.matmul %103, %11, %cst_41 {dimension_numbers = #tpu.dot_dimension_numbers<[1], [0], [0], [1], [0, 0, 1, 1], [], []>} : vector<8x32xf32>, vector<32x128xf32>, vector<8x128xf32> -> vector<8x128xf32>
    %109 = arith.addf %107, %108 : vector<8x128xf32>
    %110 = vector.extract_strided_slice %109 {offsets = [0, 0], sizes = [8, 32], strides = [1, 1]} : vector<8x128xf32> to vector<8x32xf32>
    %111 = arith.negf %110 : vector<8x32xf32>
    %112 = math.exp %111 : vector<8x32xf32>
    %cst_42 = arith.constant 1.000000e+00 : f32
    %113 = vector.broadcast %cst_42 : f32 to vector<8x32xf32>
    %114 = arith.addf %113, %112 : vector<8x32xf32>
    %115 = arith.divf %113, %114 : vector<8x32xf32>
    %116 = vector.extract_strided_slice %109 {offsets = [0, 32], sizes = [8, 32], strides = [1, 1]} : vector<8x128xf32> to vector<8x32xf32>
    %117 = arith.negf %116 : vector<8x32xf32>
    %118 = math.exp %117 : vector<8x32xf32>
    %cst_43 = arith.constant 1.000000e+00 : f32
    %119 = vector.broadcast %cst_43 : f32 to vector<8x32xf32>
    %120 = arith.addf %119, %118 : vector<8x32xf32>
    %121 = arith.divf %119, %120 : vector<8x32xf32>
    %122 = vector.extract_strided_slice %109 {offsets = [0, 64], sizes = [8, 32], strides = [1, 1]} : vector<8x128xf32> to vector<8x32xf32>
    %123 = math.tanh %122 : vector<8x32xf32>
    %124 = vector.extract_strided_slice %109 {offsets = [0, 96], sizes = [8, 32], strides = [1, 1]} : vector<8x128xf32> to vector<8x32xf32>
    %125 = arith.negf %124 : vector<8x32xf32>
    %126 = math.exp %125 : vector<8x32xf32>
    %cst_44 = arith.constant 1.000000e+00 : f32
    %127 = vector.broadcast %cst_44 : f32 to vector<8x32xf32>
    %128 = arith.addf %127, %126 : vector<8x32xf32>
    %129 = arith.divf %127, %128 : vector<8x32xf32>
    %130 = arith.mulf %121, %101 : vector<8x32xf32>
    %131 = arith.mulf %115, %123 : vector<8x32xf32>
    %132 = arith.addf %130, %131 : vector<8x32xf32>
    %133 = math.tanh %132 : vector<8x32xf32>
    %134 = arith.mulf %129, %133 : vector<8x32xf32>
    %c0_45 = arith.constant 0 : index
    %c24_46 = arith.constant 24 : index
    %c0_47 = arith.constant 0 : index
    %135 = vector.load %arg5[%c0_45, %c24_46, %c0_47] : memref<1x64x32xf32, #tpu.memory_space<vmem>>, vector<1x8x32xf32>
    %136 = vector.shape_cast %135 : vector<1x8x32xf32> to vector<8x32xf32>
    %137 = vector.shape_cast %134 : vector<8x32xf32> to vector<1x8x32xf32>
    tpu.vector_store %arg5[%c0_45, %c24_46, %c0_47], %137 {strides = array<i32>} : memref<1x64x32xf32, #tpu.memory_space<vmem>>, vector<1x8x32xf32>,
    %c32 = arith.constant 32 : index
    %c0_48 = arith.constant 0 : index
    %138 = vector.load %arg8[%c32, %c0_48] : memref<64x128xf32, #tpu.memory_space<vmem>>, vector<8x128xf32>
    %cst_49 = arith.constant dense<0.000000e+00> : vector<8x128xf32>
    %139 = tpu.matmul %134, %11, %cst_49 {dimension_numbers = #tpu.dot_dimension_numbers<[1], [0], [0], [1], [0, 0, 1, 1], [], []>} : vector<8x32xf32>, vector<32x128xf32>, vector<8x128xf32> -> vector<8x128xf32>
    %140 = arith.addf %138, %139 : vector<8x128xf32>
    %141 = vector.extract_strided_slice %140 {offsets = [0, 0], sizes = [8, 32], strides = [1, 1]} : vector<8x128xf32> to vector<8x32xf32>
    %142 = arith.negf %141 : vector<8x32xf32>
    %143 = math.exp %142 : vector<8x32xf32>
    %cst_50 = arith.constant 1.000000e+00 : f32
    %144 = vector.broadcast %cst_50 : f32 to vector<8x32xf32>
    %145 = arith.addf %144, %143 : vector<8x32xf32>
    %146 = arith.divf %144, %145 : vector<8x32xf32>
    %147 = vector.extract_strided_slice %140 {offsets = [0, 32], sizes = [8, 32], strides = [1, 1]} : vector<8x128xf32> to vector<8x32xf32>
    %148 = arith.negf %147 : vector<8x32xf32>
    %149 = math.exp %148 : vector<8x32xf32>
    %cst_51 = arith.constant 1.000000e+00 : f32
    %150 = vector.broadcast %cst_51 : f32 to vector<8x32xf32>
    %151 = arith.addf %150, %149 : vector<8x32xf32>
    %152 = arith.divf %150, %151 : vector<8x32xf32>
    %153 = vector.extract_strided_slice %140 {offsets = [0, 64], sizes = [8, 32], strides = [1, 1]} : vector<8x128xf32> to vector<8x32xf32>
    %154 = math.tanh %153 : vector<8x32xf32>
    %155 = vector.extract_strided_slice %140 {offsets = [0, 96], sizes = [8, 32], strides = [1, 1]} : vector<8x128xf32> to vector<8x32xf32>
    %156 = arith.negf %155 : vector<8x32xf32>
    %157 = math.exp %156 : vector<8x32xf32>
    %cst_52 = arith.constant 1.000000e+00 : f32
    %158 = vector.broadcast %cst_52 : f32 to vector<8x32xf32>
    %159 = arith.addf %158, %157 : vector<8x32xf32>
    %160 = arith.divf %158, %159 : vector<8x32xf32>
    %161 = arith.mulf %152, %132 : vector<8x32xf32>
    %162 = arith.mulf %146, %154 : vector<8x32xf32>
    %163 = arith.addf %161, %162 : vector<8x32xf32>
    %164 = math.tanh %163 : vector<8x32xf32>
    %165 = arith.mulf %160, %164 : vector<8x32xf32>
    %c0_53 = arith.constant 0 : index
    %c32_54 = arith.constant 32 : index
    %c0_55 = arith.constant 0 : index
    %166 = vector.load %arg5[%c0_53, %c32_54, %c0_55] : memref<1x64x32xf32, #tpu.memory_space<vmem>>, vector<1x8x32xf32>
    %167 = vector.shape_cast %166 : vector<1x8x32xf32> to vector<8x32xf32>
    %168 = vector.shape_cast %165 : vector<8x32xf32> to vector<1x8x32xf32>
    tpu.vector_store %arg5[%c0_53, %c32_54, %c0_55], %168 {strides = array<i32>} : memref<1x64x32xf32, #tpu.memory_space<vmem>>, vector<1x8x32xf32>,
    %c40 = arith.constant 40 : index
    %c0_56 = arith.constant 0 : index
    %169 = vector.load %arg8[%c40, %c0_56] : memref<64x128xf32, #tpu.memory_space<vmem>>, vector<8x128xf32>
    %cst_57 = arith.constant dense<0.000000e+00> : vector<8x128xf32>
    %170 = tpu.matmul %165, %11, %cst_57 {dimension_numbers = #tpu.dot_dimension_numbers<[1], [0], [0], [1], [0, 0, 1, 1], [], []>} : vector<8x32xf32>, vector<32x128xf32>, vector<8x128xf32> -> vector<8x128xf32>
    %171 = arith.addf %169, %170 : vector<8x128xf32>
    %172 = vector.extract_strided_slice %171 {offsets = [0, 0], sizes = [8, 32], strides = [1, 1]} : vector<8x128xf32> to vector<8x32xf32>
    %173 = arith.negf %172 : vector<8x32xf32>
    %174 = math.exp %173 : vector<8x32xf32>
    %cst_58 = arith.constant 1.000000e+00 : f32
    %175 = vector.broadcast %cst_58 : f32 to vector<8x32xf32>
    %176 = arith.addf %175, %174 : vector<8x32xf32>
    %177 = arith.divf %175, %176 : vector<8x32xf32>
    %178 = vector.extract_strided_slice %171 {offsets = [0, 32], sizes = [8, 32], strides = [1, 1]} : vector<8x128xf32> to vector<8x32xf32>
    %179 = arith.negf %178 : vector<8x32xf32>
    %180 = math.exp %179 : vector<8x32xf32>
    %cst_59 = arith.constant 1.000000e+00 : f32
    %181 = vector.broadcast %cst_59 : f32 to vector<8x32xf32>
    %182 = arith.addf %181, %180 : vector<8x32xf32>
    %183 = arith.divf %181, %182 : vector<8x32xf32>
    %184 = vector.extract_strided_slice %171 {offsets = [0, 64], sizes = [8, 32], strides = [1, 1]} : vector<8x128xf32> to vector<8x32xf32>
    %185 = math.tanh %184 : vector<8x32xf32>
    %186 = vector.extract_strided_slice %171 {offsets = [0, 96], sizes = [8, 32], strides = [1, 1]} : vector<8x128xf32> to vector<8x32xf32>
    %187 = arith.negf %186 : vector<8x32xf32>
    %188 = math.exp %187 : vector<8x32xf32>
    %cst_60 = arith.constant 1.000000e+00 : f32
    %189 = vector.broadcast %cst_60 : f32 to vector<8x32xf32>
    %190 = arith.addf %189, %188 : vector<8x32xf32>
    %191 = arith.divf %189, %190 : vector<8x32xf32>
    %192 = arith.mulf %183, %163 : vector<8x32xf32>
    %193 = arith.mulf %177, %185 : vector<8x32xf32>
    %194 = arith.addf %192, %193 : vector<8x32xf32>
    %195 = math.tanh %194 : vector<8x32xf32>
    %196 = arith.mulf %191, %195 : vector<8x32xf32>
    %c0_61 = arith.constant 0 : index
    %c40_62 = arith.constant 40 : index
    %c0_63 = arith.constant 0 : index
    %197 = vector.load %arg5[%c0_61, %c40_62, %c0_63] : memref<1x64x32xf32, #tpu.memory_space<vmem>>, vector<1x8x32xf32>
    %198 = vector.shape_cast %197 : vector<1x8x32xf32> to vector<8x32xf32>
    %199 = vector.shape_cast %196 : vector<8x32xf32> to vector<1x8x32xf32>
    tpu.vector_store %arg5[%c0_61, %c40_62, %c0_63], %199 {strides = array<i32>} : memref<1x64x32xf32, #tpu.memory_space<vmem>>, vector<1x8x32xf32>,
    %c48 = arith.constant 48 : index
    %c0_64 = arith.constant 0 : index
    %200 = vector.load %arg8[%c48, %c0_64] : memref<64x128xf32, #tpu.memory_space<vmem>>, vector<8x128xf32>
    %cst_65 = arith.constant dense<0.000000e+00> : vector<8x128xf32>
    %201 = tpu.matmul %196, %11, %cst_65 {dimension_numbers = #tpu.dot_dimension_numbers<[1], [0], [0], [1], [0, 0, 1, 1], [], []>} : vector<8x32xf32>, vector<32x128xf32>, vector<8x128xf32> -> vector<8x128xf32>
    %202 = arith.addf %200, %201 : vector<8x128xf32>
    %203 = vector.extract_strided_slice %202 {offsets = [0, 0], sizes = [8, 32], strides = [1, 1]} : vector<8x128xf32> to vector<8x32xf32>
    %204 = arith.negf %203 : vector<8x32xf32>
    %205 = math.exp %204 : vector<8x32xf32>
    %cst_66 = arith.constant 1.000000e+00 : f32
    %206 = vector.broadcast %cst_66 : f32 to vector<8x32xf32>
    %207 = arith.addf %206, %205 : vector<8x32xf32>
    %208 = arith.divf %206, %207 : vector<8x32xf32>
    %209 = vector.extract_strided_slice %202 {offsets = [0, 32], sizes = [8, 32], strides = [1, 1]} : vector<8x128xf32> to vector<8x32xf32>
    %210 = arith.negf %209 : vector<8x32xf32>
    %211 = math.exp %210 : vector<8x32xf32>
    %cst_67 = arith.constant 1.000000e+00 : f32
    %212 = vector.broadcast %cst_67 : f32 to vector<8x32xf32>
    %213 = arith.addf %212, %211 : vector<8x32xf32>
    %214 = arith.divf %212, %213 : vector<8x32xf32>
    %215 = vector.extract_strided_slice %202 {offsets = [0, 64], sizes = [8, 32], strides = [1, 1]} : vector<8x128xf32> to vector<8x32xf32>
    %216 = math.tanh %215 : vector<8x32xf32>
    %217 = vector.extract_strided_slice %202 {offsets = [0, 96], sizes = [8, 32], strides = [1, 1]} : vector<8x128xf32> to vector<8x32xf32>
    %218 = arith.negf %217 : vector<8x32xf32>
    %219 = math.exp %218 : vector<8x32xf32>
    %cst_68 = arith.constant 1.000000e+00 : f32
    %220 = vector.broadcast %cst_68 : f32 to vector<8x32xf32>
    %221 = arith.addf %220, %219 : vector<8x32xf32>
    %222 = arith.divf %220, %221 : vector<8x32xf32>
    %223 = arith.mulf %214, %194 : vector<8x32xf32>
    %224 = arith.mulf %208, %216 : vector<8x32xf32>
    %225 = arith.addf %223, %224 : vector<8x32xf32>
    %226 = math.tanh %225 : vector<8x32xf32>
    %227 = arith.mulf %222, %226 : vector<8x32xf32>
    %c0_69 = arith.constant 0 : index
    %c48_70 = arith.constant 48 : index
    %c0_71 = arith.constant 0 : index
    %228 = vector.load %arg5[%c0_69, %c48_70, %c0_71] : memref<1x64x32xf32, #tpu.memory_space<vmem>>, vector<1x8x32xf32>
    %229 = vector.shape_cast %228 : vector<1x8x32xf32> to vector<8x32xf32>
    %230 = vector.shape_cast %227 : vector<8x32xf32> to vector<1x8x32xf32>
    tpu.vector_store %arg5[%c0_69, %c48_70, %c0_71], %230 {strides = array<i32>} : memref<1x64x32xf32, #tpu.memory_space<vmem>>, vector<1x8x32xf32>,
    %c56 = arith.constant 56 : index
    %c0_72 = arith.constant 0 : index
    %231 = vector.load %arg8[%c56, %c0_72] : memref<64x128xf32, #tpu.memory_space<vmem>>, vector<8x128xf32>
    %cst_73 = arith.constant dense<0.000000e+00> : vector<8x128xf32>
    %232 = tpu.matmul %227, %11, %cst_73 {dimension_numbers = #tpu.dot_dimension_numbers<[1], [0], [0], [1], [0, 0, 1, 1], [], []>} : vector<8x32xf32>, vector<32x128xf32>, vector<8x128xf32> -> vector<8x128xf32>
    %233 = arith.addf %231, %232 : vector<8x128xf32>
    %234 = vector.extract_strided_slice %233 {offsets = [0, 0], sizes = [8, 32], strides = [1, 1]} : vector<8x128xf32> to vector<8x32xf32>
    %235 = arith.negf %234 : vector<8x32xf32>
    %236 = math.exp %235 : vector<8x32xf32>
    %cst_74 = arith.constant 1.000000e+00 : f32
    %237 = vector.broadcast %cst_74 : f32 to vector<8x32xf32>
    %238 = arith.addf %237, %236 : vector<8x32xf32>
    %239 = arith.divf %237, %238 : vector<8x32xf32>
    %240 = vector.extract_strided_slice %233 {offsets = [0, 32], sizes = [8, 32], strides = [1, 1]} : vector<8x128xf32> to vector<8x32xf32>
    %241 = arith.negf %240 : vector<8x32xf32>
    %242 = math.exp %241 : vector<8x32xf32>
    %cst_75 = arith.constant 1.000000e+00 : f32
    %243 = vector.broadcast %cst_75 : f32 to vector<8x32xf32>
    %244 = arith.addf %243, %242 : vector<8x32xf32>
    %245 = arith.divf %243, %244 : vector<8x32xf32>
    %246 = vector.extract_strided_slice %233 {offsets = [0, 64], sizes = [8, 32], strides = [1, 1]} : vector<8x128xf32> to vector<8x32xf32>
    %247 = math.tanh %246 : vector<8x32xf32>
    %248 = vector.extract_strided_slice %233 {offsets = [0, 96], sizes = [8, 32], strides = [1, 1]} : vector<8x128xf32> to vector<8x32xf32>
    %249 = arith.negf %248 : vector<8x32xf32>
    %250 = math.exp %249 : vector<8x32xf32>
    %cst_76 = arith.constant 1.000000e+00 : f32
    %251 = vector.broadcast %cst_76 : f32 to vector<8x32xf32>
    %252 = arith.addf %251, %250 : vector<8x32xf32>
    %253 = arith.divf %251, %252 : vector<8x32xf32>
    %254 = arith.mulf %245, %225 : vector<8x32xf32>
    %255 = arith.mulf %239, %247 : vector<8x32xf32>
    %256 = arith.addf %254, %255 : vector<8x32xf32>
    %257 = math.tanh %256 : vector<8x32xf32>
    %258 = arith.mulf %253, %257 : vector<8x32xf32>
    %c0_77 = arith.constant 0 : index
    %c56_78 = arith.constant 56 : index
    %c0_79 = arith.constant 0 : index
    %259 = vector.load %arg5[%c0_77, %c56_78, %c0_79] : memref<1x64x32xf32, #tpu.memory_space<vmem>>, vector<1x8x32xf32>
    %260 = vector.shape_cast %259 : vector<1x8x32xf32> to vector<8x32xf32>
    %261 = vector.shape_cast %258 : vector<8x32xf32> to vector<1x8x32xf32>
    tpu.vector_store %arg5[%c0_77, %c56_78, %c0_79], %261 {strides = array<i32>} : memref<1x64x32xf32, #tpu.memory_space<vmem>>, vector<1x8x32xf32>,
    %c0_80 = arith.constant 0 : index
    %c0_81 = arith.constant 0 : index
    %c0_82 = arith.constant 0 : index
    %262 = vector.load %arg6[%c0_80, %c0_81, %c0_82] : memref<1x8x32xf32, #tpu.memory_space<vmem>>, vector<1x8x32xf32>
    %263 = vector.shape_cast %262 : vector<1x8x32xf32> to vector<8x32xf32>
    %264 = vector.shape_cast %258 : vector<8x32xf32> to vector<1x8x32xf32>
    tpu.vector_store %arg6[%c0_80, %c0_81, %c0_82], %264 {strides = array<i32>} : memref<1x8x32xf32, #tpu.memory_space<vmem>>, vector<1x8x32xf32>,
    %c0_83 = arith.constant 0 : index
    %c0_84 = arith.constant 0 : index
    %c0_85 = arith.constant 0 : index
    %265 = vector.load %arg7[%c0_83, %c0_84, %c0_85] : memref<1x8x32xf32, #tpu.memory_space<vmem>>, vector<1x8x32xf32>
    %266 = vector.shape_cast %265 : vector<1x8x32xf32> to vector<8x32xf32>
    %267 = vector.shape_cast %256 : vector<8x32xf32> to vector<1x8x32xf32>
    tpu.vector_store %arg7[%c0_83, %c0_84, %c0_85], %267 {strides = array<i32>} : memref<1x8x32xf32, #tpu.memory_space<vmem>>, vector<1x8x32xf32>,
    return
  }
  func.func @transform_0(%arg0: i32) -> (i32, i32, i32) {
    %c0_i32 = arith.constant 0 : i32
    %c0_i32_0 = arith.constant 0 : i32
    %c0_i32_1 = arith.constant 0 : i32
    return %arg0, %c0_i32, %c0_i32_0 : i32, i32, i32
  }
  func.func @transform_1(%arg0: i32) -> (i32, i32, i32) {
    %c0_i32 = arith.constant 0 : i32
    %c0_i32_0 = arith.constant 0 : i32
    %c0_i32_1 = arith.constant 0 : i32
    return %arg0, %c0_i32, %c0_i32_0 : i32, i32, i32
  }
  func.func @transform_2(%arg0: i32) -> (i32, i32, i32) {
    %c0_i32 = arith.constant 0 : i32
    %c0_i32_0 = arith.constant 0 : i32
    %c0_i32_1 = arith.constant 0 : i32
    return %arg0, %c0_i32, %c0_i32_0 : i32, i32, i32
  }
  func.func @transform_3(%arg0: i32) -> (i32, i32, i32) {
    %c0_i32 = arith.constant 0 : i32
    %c0_i32_0 = arith.constant 0 : i32
    %c0_i32_1 = arith.constant 0 : i32
    return %arg0, %c0_i32, %c0_i32_0 : i32, i32, i32
  }
  func.func @transform_4(%arg0: i32) -> (i32, i32, i32) {
    %c0_i32 = arith.constant 0 : i32
    %c0_i32_0 = arith.constant 0 : i32
    %c0_i32_1 = arith.constant 0 : i32
    return %arg0, %c0_i32, %c0_i32_0 : i32, i32, i32
  }
  func.func @transform_5(%arg0: i32) -> (i32, i32, i32) {
    %c0_i32 = arith.constant 0 : i32
    %c0_i32_0 = arith.constant 0 : i32
    %c0_i32_1 = arith.constant 0 : i32
    return %arg0, %c0_i32, %c0_i32_0 : i32, i32, i32
  }
  func.func @transform_6(%arg0: i32) -> (i32, i32, i32) {
    %c0_i32 = arith.constant 0 : i32
    %c0_i32_0 = arith.constant 0 : i32
    %c0_i32_1 = arith.constant 0 : i32
    return %arg0, %c0_i32, %c0_i32_0 : i32, i32, i32
  }
}

</mosaic_0001>

<bundles_post_ra>
// kernel: tpu_custom_call.1
= control target key start
LH: loop header
LB: loop body
LE: loop exit
PB: predicated region body
PF: predicated region fallthrough
CT: control target
= control target key end

     0   :  { %12 = vsyncpa [#allocation4], 0  ;;  %s2329_s0 = inlined_call_operand.vmem [shape: f32[2,64,16], index: 0, kind: input, shape index: {}]   ;;  %s2330_s1 = inlined_call_operand.vmem [shape: f32[2,16,128], index: 1, kind: input, shape index: {}]   ;;  %s2331_s2 = inlined_call_operand.vmem [shape: f32[2,32,128], index: 2, kind: input, shape index: {}]   ;;  %s2332_s3 = inlined_call_operand.vmem [shape: f32[2,1,128], index: 3, kind: input, shape index: {}]   ;;  %s2333_s4 = inlined_call_operand.vmem [shape: f32[2,64,32], index: 4, kind: output, shape index: {0}]   ;;  %s2334_s5 = inlined_call_operand.hbm [shape: f32[2,8,32], index: 5, kind: output, shape index: {1}]   ;;  %s2335_s6 = inlined_call_operand.hbm [shape: f32[2,8,32], index: 6, kind: output, shape index: {2}]  }
   0x1   :  { %14 = vsyncpa [#allocation4 + $0x1], 0 }
   0x2   :  { %15 = vsyncpa [#allocation6], 0 }
   0x3   :  { %17 = vsyncpa [#allocation6 + $0x1], 0  ;;  %s2014_s21 = smov 0   ;;  %s2016_s22 = smov 0  }
   0x4   :  { %s2018_s23 = smov 0   ;;  %s2020_s24 = smov 0  }
   0x5 LB: > { %s2035_s25 = sadd.s32 4294967295, %s1969_s24   ;;  %s1507_s26 = sadd.s32 4294967294, %s1969_s24   ;;  %s1969_s24 = sphi %s2020_s24, %s2341_s24   ;;  %s1965_s23 = sphi %s2018_s23, %s2340_s23   ;;  %s1961_s22 = sphi %s2016_s22, %s2339_s22   ;;  %s1957_s21 = sphi %s2014_s21, %s2338_s21  }
   0x6   : > { %s2039_s27 = sadd.s32 1, %s1969_s24   ;;  %s160_s28 = sadd.s32 1, %s1965_s23 }
   0x7   : > { %s157_s29 = ssub.s32 %s1969_s24, %s2039_s27  ;;  %p170_p0 = scmp.ne.s32.totalorder %s1965_s23, %s1961_s22 }
   0x8   : > { %p158_p1 = scmp.eq.s32.totalorder %s157_s29, 0  ;;  %p171_p2 = scmp.eq.s32.totalorder %s2035_s25, 1 }
   0x9   : > { %p176_p3 = scmp.ne.s32.totalorder %s1961_s22, %s1957_s21  ;;  %p177_p4 = scmp.eq.s32.totalorder %s1507_s26, 1 }
   0xa   : > { %s2050_s30 = scalar_select %p158_p1, %s1965_s23, %s160_s28  }
   0xb   : > { %p2052_p5 = por %p171_p2, %p170_p0  ;;  %p2056_p6 = por %p177_p4, %p176_p3 }
   0xc   : > { %p1510_p7 = scmp.ge.s32.totalorder %s1969_s24, 1  ;;  %p251_p8 = scmp.lt.s32.totalorder %s1969_s24, 3 }
   0xe   : > { %p252_p9 = pnand %p1510_p7, %p251_p8 }
   0xf   : > { %p304_p10 = scmp.lt.s32.totalorder (!%p252_p9), %s2035_s25, 1  ;;  %v1971_v0 = vmov (!%p252_p9), 0.0|0.0   ;;  %vm1972_vm0 = vmmov (!%p252_p9), 0   ;;  %v1973_v1 = vmov (!%p252_p9), 0.0   ;;  %vm344_vm1 = vcmask (!%p252_p9), 130048   ;;  %s1975_s12 = smov (!%p252_p9), 32  }
  0x10   : > { %255 = sbr.rel (%p252_p9) target bundleno = 5668 (0x1624), region = 36  ;;  %1713 = vmatprep.subr.bf16.mxu1 (!%p252_p9), %v1971_v0  ;;  %1629 = vmatprep.mubr.msk.f32.mxu1 (!%p252_p9), %vm1972_vm0, %v1973_v1  ;;  %vm487_vm2 = vcmask (!%p252_p9), 261120   ;;  %s2237_s16 = sand.u32 (!%p252_p9), 1, %s1961_s22  }
  0x17   : > { %s2067_s9 = scalar_select %p304_p10, %s2035_s25, 1 }
  0x19   : > { %s1552_s10 = sshll.u32 %s2067_s9, 4  ;;  %s1553_s11 = sshll.u32 %s2067_s9, 5 }
  0x1a   : > { %s313_s14 = scalar_lea.vmem %s2330_s1, %s1552_s10  ;;  %s318_s17 = scalar_lea.vmem %s2331_s2, %s1553_s11 }
  0x1b   : > { %v335_v2 = vld [vmem:[%s313_s14] sm:$0xff]  ;;  %v336_v3 = vld [vmem:[%s313_s14 + $0x8] sm:$0xff]  ;;  %s1551_s18 = sshll.u32 %s2067_s9, 6  ;;  %v484_v7 = vld [vmem:[%s318_s17 + $0x10] sm:$0xff]  ;;  %s321_s10 = scalar_lea.vmem %s2332_s3, %s2067_s9 }
  0x1c   : > { %v482_v4 = vld [vmem:[%s318_s17] sm:$0xff]  ;;  %v1709_v5 = vpack.c.bf16 %v336_v3, %v335_v2  ;;  %v483_v6 = vld [vmem:[%s318_s17 + $0x8] sm:$0xff]  ;;  %v485_v8 = vld [vmem:[%s318_s17 + $0x18] sm:$0xff]  ;;  %s2083_s26 = scalar_lea.vmem %s2329_s0, %s1551_s18  ;;  %s1974_s11 = smov 64  }
  0x1d   : > { %v2085_v9 = vpack.c.bf16 %v483_v6, %v482_v4  ;;  %v327_v10 = vld [vmem:[%s2083_s26] sm:$0xff]  ;;  %v2089_v11 = vpack.c.bf16 %v485_v8, %v484_v7  ;;  %v328_v12 = vld [vmem:[%s2083_s26 + $0x8] sm:$0xff]  ;;  %s2125_s15 = scalar_lea.vmem %s2333_s4, %s1551_s18  ;;  %v329_v48 = vld [vmem:[%s2083_s26 + $0x10] sm:$0xff]  ;;  %s1976_s9 = smov 96  }
  0x1e   : > { %1710 = vmatprep.subr.bf16.mxu0 %v1709_v5  ;;  %1609 = vmatprep.mubr.msk.f32.mxu0 %vm344_vm1, %v327_v10  ;;  %v2113_v13 = vld [vmem:[%s321_s10] ss:$0 sm:$0xff]  ;;  %v330_v49 = vld [vmem:[%s2083_s26 + $0x18] sm:$0xff]  ;;  %v332_v51 = vld [vmem:[%s2083_s26 + $0x28] sm:$0xff]  ;;  %s1511_s17 = sshll.u32 %s2237_s16, 3  ;;  %s1547_s18 = sshll.u32 %s2035_s25, 7 }
  0x1f   : > { %1715 = vmatpush3.bf16.msra.mxu1 %v2085_v9  ;;  %1712 = vmatpush3.bf16.msra.mxu0 %v1709_v5  ;;  %v331_v50 = vld [vmem:[%s2083_s26 + $0x20] sm:$0xff]  ;;  %v333_v52 = vld [vmem:[%s2083_s26 + $0x30] sm:$0xff]  ;;  %v334_v53 = vld [vmem:[%s2083_s26 + $0x38] sm:$0xff]  ;;  %s303_s19 = scalar_lea.vmem [#allocation5], %s1511_s17  ;;  %s2249_s29 = scalar_lea.hbm %s2335_s6, %s1547_s18 }
  0x20   : > { %1716 = vmatprep.subr.bf16.mxu1 %v1971_v0  ;;  %1725 = vmatprep.subr.bf16.mxu0 %v1971_v0  ;;  %s1358_s20 = sshll.u32 %s303_s19, 4  ;;  %s1329_s10 = scalar_lea.sflag [#allocation6], %s2237_s16  ;;  %s2251_s20 = int_to_ptr.vmem [resolvable:$true] %s1358_s20 }
  0x22   : > { %1610 = vmatmul.mubr.msk.f32.vlgmr.msra.gmra.mrb[0].mxu0 %vm344_vm1, %v328_v12 }
  0x23   : > { %1718 = vmatpush3.bf16.msra.mxu1 %v2089_v11  ;;  %1727 = vmatpush3.bf16.msra.mxu0 %v2085_v9 }
  0x24   : > { %1719 = vmatprep.subr.bf16.mxu1 %v1971_v0  ;;  %1728 = vmatprep.subr.bf16.mxu0 %v1971_v0 }
  0x25   : > { %1612 = vmatprep.mubr.msk.f32.mxu0 %vm344_vm1, %v329_v48 }
  0x26   : > { %1630 = vmatmul.mubr.f32.vlgmr.msra.gmra.mrb[0].mxu1 %v1973_v1  ;;  %1613 = vmatmul.mubr.msk.f32.gmra.mrb[2].mxu0 %vm344_vm1, %v330_v49 }
  0x27   : > { %1721 = vmatpush3.bf16.msra.mxu1 %v2085_v9  ;;  %1640 = vmatprep.mubr.msk.f32.mxu1 %vm1972_vm0, %v1973_v1 }
  0x28   : > { %1722 = vmatprep.subr.bf16.mxu1 %v1971_v0  ;;  %1730 = vmatpush3.bf16.msra.mxu0 %v2089_v11 }
  0x29   : > { %1737 = vmatprep.subr.bf16.mxu0 %v1971_v0  ;;  %1615 = vmatprep.mubr.msk.f32.mxu0 %vm344_vm1, %v331_v50 }
  0x2a   : > { %1616 = vmatmul.mubr.msk.f32.gmra.mrb[4].mxu0 %vm344_vm1, %v332_v51 }
  0x2b   : > { %1724 = vmatpush3.bf16.msra.mxu1 %v2089_v11  ;;  %1618 = vmatprep.mubr.msk.f32.mxu0 %vm344_vm1, %v333_v52 }
  0x2c   : > { %1731 = vmatprep.subr.bf16.mxu1 %v1971_v0 }
  0x2e   : > { %1619 = vmatmul.mubr.msk.f32.gmra.mrb[6].mxu0 %vm344_vm1, %v334_v53 }
  0x2f   : > { %1651 = vmatprep.mubr.msk.f32.mxu0 %vm1972_vm0, %v1973_v1 }
  0xf5   : > { %v1611_v14 = vpop.f32.mrb[0].mxu0 }
  0xf6   : > { %v435_v15 = vpop.f32.mrb[1].mxu0  ;;  %v441_v34 = vadd.f32 %v1611_v14, %v2113_v13 }
  0xf7   : > { %v436_v16 = vadd.f32 %v2113_v13, %v435_v15 }
  0xf9   : > { %v557_v17 = vpop.f32.mrb[0].mxu1  ;;  %v1614_v57 = vpop.f32.mrb[2].mxu0 }
  0xfa   : > { %v561_v18 = vadd.f32 %v557_v17, %v436_v16  ;;  %v1631_v19 = vpop.f32.mrb[1].mxu1  ;;  %v445_v58 = vpop.f32.mrb[3].mxu0 }
  0xfb   : > { %v446_v2 = vadd.f32 %v2113_v13, %v445_v58 }
  0xfc   : > { %1811 = vtanh.f32 %v561_v18  ;;  %v1530_v21 = vmul.f32 -1.442695, %v561_v18 }
  0xfd   : > { %v2155_v59 = vpop.f32.mrb[4].mxu0 }
  0xfe   : > { %1813 = vpow2.f32 %v1530_v21  ;;  %v2157_v60 = vpop.f32.mrb[5].mxu0 }
 0x101   : > { %v2159_v61 = vpop.f32.mrb[6].mxu0 }
 0x102   : > { %v2161_v62 = vpop.f32.mrb[7].mxu0 }
 0x106   : > { %v1812_v20 = vpop.eup %1811 }
 0x107   : > { %571 = vrot.lane.b32.xlu0 %v1812_v20, %s1974_s11 }
 0x108   : > { %v1814_v22 = vpop.eup %1813 }
 0x109   : > { %v565_v23 = vadd.f32 1.0, %v1814_v22 }
 0x10b   : > { %1815 = vrcp.f32 %v565_v23  ;;  %v451_v23 = vadd.f32 %v1614_v57, %v2113_v13 }
 0x115   : > { %v1816_v24 = vpop.eup %1815 }
 0x116   : > { %v569_v27 = vmul.f32 0.0, %v1816_v24 }
 0x179   : > { %v572_v25 = vpop.permute.xlu0 %571 }
 0x17a   : > { %v574_v26 = vmul.f32 %v1816_v24, %v572_v25 }
 0x17c   : > { %576 = vrot.lane.b32.xlu0 %v574_v26, %s1975_s12 }
 0x1ee   : > { %v577_v28 = vpop.permute.xlu0 %576 }
 0x1ef   : > { %v579_v29 = vadd.f32 %v577_v28, %v569_v27 }
 0x1f1   : > { %1817 = vtanh.f32 %v579_v29 }
 0x1fb   : > { %v1818_v30 = vpop.eup %1817 }
 0x1fc   : > { %582 = vrot.lane.b32.xlu1 %v1818_v30, %s1974_s11 }
 0x26e   : > { %v583_v31 = vpop.permute.xlu1 %582 }
 0x26f   : > { %v585_v32 = vmul.f32 %v1816_v24, %v583_v31 }
 0x271   : > { %587 = vrot.lane.b32.xlu1 %v585_v32, %s1975_s12 }
 0x2e3   : > { %v588_v33 = vpop.permute.xlu1 %587 }
 0x2e4   : > { %590 = vst.msk [vmem:[%s2125_s15] sm:$0xff] %vm487_vm2, %v588_v33  ;;  %1641 = vmatmul.mubr.msk.f32.vlgmr.msra.gmra.mrb[2].mxu1 %vm487_vm2, %v588_v33 }
 0x2e5   : > { %1733 = vmatpush3.bf16.msra.mxu1 %v2085_v9  ;;  %1662 = vmatprep.mubr.msk.f32.mxu1 %vm1972_vm0, %v1973_v1 }
 0x2e6   : > { %1734 = vmatprep.subr.bf16.mxu1 %v1971_v0 }
 0x2e9   : > { %1736 = vmatpush3.bf16.msra.mxu1 %v2089_v11 }
 0x2ea   : > { %1743 = vmatprep.subr.bf16.mxu1 %v1971_v0 }
 0x3b7   : > { %v660_v35 = vpop.f32.mrb[2].mxu1 }
 0x3b8   : > { %v664_v36 = vadd.f32 %v660_v35, %v441_v34  ;;  %v1642_v37 = vpop.f32.mrb[3].mxu1 }
 0x3ba   : > { %1819 = vtanh.f32 %v664_v36  ;;  %v1532_v39 = vmul.f32 -1.442695, %v664_v36 }
 0x3bc   : > { %1821 = vpow2.f32 %v1532_v39 }
 0x3c4   : > { %v1820_v38 = vpop.eup %1819 }
 0x3c5   : > { %674 = vrot.lane.b32.xlu0 %v1820_v38, %s1974_s11 }
 0x3c6   : > { %v1822_v40 = vpop.eup %1821 }
 0x3c7   : > { %v668_v41 = vadd.f32 1.0, %v1822_v40 }
 0x3c9   : > { %1823 = vrcp.f32 %v668_v41  ;;  %v456_v41 = vadd.f32 %v2113_v13, %v2157_v60  ;;  %v461_v60 = vadd.f32 %v2155_v59, %v2113_v13 }
 0x3d3   : > { %v1824_v42 = vpop.eup %1823 }
 0x3d4   : > { %v672_v45 = vmul.f32 %v1824_v42, %v579_v29 }
 0x437   : > { %v675_v43 = vpop.permute.xlu0 %674 }
 0x438   : > { %v677_v44 = vmul.f32 %v1824_v42, %v675_v43 }
 0x43a   : > { %679 = vrot.lane.b32.xlu1 %v677_v44, %s1975_s12 }
 0x4ac   : > { %v680_v46 = vpop.permute.xlu1 %679 }
 0x4ad   : > { %v682_v47 = vadd.f32 %v680_v46, %v672_v45 }
 0x4af   : > { %1825 = vtanh.f32 %v682_v47 }
 0x4b9   : > { %v1826_v54 = vpop.eup %1825 }
 0x4ba   : > { %685 = vrot.lane.b32.xlu0 %v1826_v54, %s1974_s11 }
 0x52c   : > { %v686_v55 = vpop.permute.xlu0 %685 }
 0x52d   : > { %v688_v56 = vmul.f32 %v1824_v42, %v686_v55 }
 0x52f   : > { %690 = vrot.lane.b32.xlu1 %v688_v56, %s1975_s12 }
 0x5a1   : > { %v691_v63 = vpop.permute.xlu1 %690 }
 0x5a2   : > { %693 = vst.msk [vmem:[%s2125_s15 + $0x8] sm:$0xff] %vm487_vm2, %v691_v63  ;;  %1652 = vmatmul.mubr.msk.f32.vlgmr.msra.gmra.mrb[8].mxu0 %vm487_vm2, %v691_v63 }
 0x5a3   : > { %1739 = vmatpush3.bf16.msra.mxu0 %v2085_v9  ;;  %1673 = vmatprep.mubr.msk.f32.mxu0 %vm1972_vm0, %v1973_v1 }
 0x5a4   : > { %1740 = vmatprep.subr.bf16.mxu0 %v1971_v0 }
 0x5a7   : > { %1742 = vmatpush3.bf16.msra.mxu0 %v2089_v11 }
 0x5a8   : > { %1749 = vmatprep.subr.bf16.mxu0 %v1971_v0 }
 0x675   : > { %v763_v3 = vpop.f32.mrb[8].mxu0 }
 0x676   : > { %v767_v4 = vadd.f32 %v763_v3, %v446_v2  ;;  %v1653_v5 = vpop.f32.mrb[9].mxu0 }
 0x678   : > { %1827 = vtanh.f32 %v767_v4  ;;  %v1534_v7 = vmul.f32 -1.442695, %v767_v4 }
 0x67a   : > { %1829 = vpow2.f32 %v1534_v7 }
 0x682   : > { %v1828_v6 = vpop.eup %1827 }
 0x683   : > { %777 = vrot.lane.b32.xlu0 %v1828_v6, %s1974_s11 }
 0x684   : > { %v1830_v8 = vpop.eup %1829 }
 0x685   : > { %v771_v10 = vadd.f32 1.0, %v1830_v8 }
 0x687   : > { %1831 = vrcp.f32 %v771_v10 }
 0x691   : > { %v1832_v12 = vpop.eup %1831 }
 0x692   : > { %v775_v16 = vmul.f32 %v1832_v12, %v682_v47 }
 0x6f5   : > { %v778_v14 = vpop.permute.xlu0 %777 }
 0x6f6   : > { %v780_v15 = vmul.f32 %v1832_v12, %v778_v14 }
 0x6f8   : > { %782 = vrot.lane.b32.xlu1 %v780_v15, %s1975_s12 }
 0x76a   : > { %v783_v17 = vpop.permute.xlu1 %782 }
 0x76b   : > { %v785_v18 = vadd.f32 %v783_v17, %v775_v16  ;;  %v466_v16 = vadd.f32 %v2113_v13, %v2161_v62 }
 0x76d   : > { %1833 = vtanh.f32 %v785_v18 }
 0x777   : > { %v1834_v19 = vpop.eup %1833 }
 0x778   : > { %788 = vrot.lane.b32.xlu0 %v1834_v19, %s1974_s11 }
 0x7ea   : > { %v789_v20 = vpop.permute.xlu0 %788 }
 0x7eb   : > { %v791_v21 = vmul.f32 %v1832_v12, %v789_v20 }
 0x7ed   : > { %793 = vrot.lane.b32.xlu1 %v791_v21, %s1975_s12 }
 0x85f   : > { %v794_v22 = vpop.permute.xlu1 %793 }
 0x860   : > { %796 = vst.msk [vmem:[%s2125_s15 + $0x10] sm:$0xff] %vm487_vm2, %v794_v22  ;;  %1663 = vmatmul.mubr.msk.f32.vlgmr.msra.gmra.mrb[4].mxu1 %vm487_vm2, %v794_v22 }
 0x861   : > { %1745 = vmatpush3.bf16.msra.mxu1 %v2085_v9  ;;  %1684 = vmatprep.mubr.msk.f32.mxu1 %vm1972_vm0, %v1973_v1 }
 0x862   : > { %1746 = vmatprep.subr.bf16.mxu1 %v1971_v0 }
 0x865   : > { %1748 = vmatpush3.bf16.msra.mxu1 %v2089_v11 }
 0x866   : > { %1755 = vmatprep.subr.bf16.mxu1 %v1971_v0 }
 0x933   : > { %v866_v24 = vpop.f32.mrb[4].mxu1 }
 0x934   : > { %v870_v25 = vadd.f32 %v866_v24, %v451_v23  ;;  %v1664_v26 = vpop.f32.mrb[5].mxu1 }
 0x936   : > { %1835 = vtanh.f32 %v870_v25  ;;  %v1536_v28 = vmul.f32 -1.442695, %v870_v25 }
 0x938   : > { %1837 = vpow2.f32 %v1536_v28 }
 0x940   : > { %v1836_v27 = vpop.eup %1835 }
 0x941   : > { %880 = vrot.lane.b32.xlu0 %v1836_v27, %s1974_s11 }
 0x942   : > { %v1838_v29 = vpop.eup %1837 }
 0x943   : > { %v874_v30 = vadd.f32 1.0, %v1838_v29 }
 0x945   : > { %1839 = vrcp.f32 %v874_v30 }
 0x94f   : > { %v1840_v31 = vpop.eup %1839 }
 0x950   : > { %v878_v34 = vmul.f32 %v1840_v31, %v785_v18 }
 0x9b3   : > { %v881_v32 = vpop.permute.xlu0 %880 }
 0x9b4   : > { %v883_v33 = vmul.f32 %v1840_v31, %v881_v32 }
 0x9b6   : > { %885 = vrot.lane.b32.xlu1 %v883_v33, %s1975_s12  ;;  %v471_v33 = vadd.f32 %v2159_v61, %v2113_v13 }
 0xa28   : > { %v886_v35 = vpop.permute.xlu1 %885 }
 0xa29   : > { %v888_v36 = vadd.f32 %v886_v35, %v878_v34 }
 0xa2b   : > { %1841 = vtanh.f32 %v888_v36 }
 0xa35   : > { %v1842_v37 = vpop.eup %1841 }
 0xa36   : > { %891 = vrot.lane.b32.xlu0 %v1842_v37, %s1974_s11 }
 0xaa8   : > { %v892_v38 = vpop.permute.xlu0 %891 }
 0xaa9   : > { %v894_v39 = vmul.f32 %v1840_v31, %v892_v38 }
 0xaab   : > { %896 = vrot.lane.b32.xlu1 %v894_v39, %s1975_s12 }
 0xb1d   : > { %v897_v40 = vpop.permute.xlu1 %896 }
 0xb1e   : > { %899 = vst.msk [vmem:[%s2125_s15 + $0x18] sm:$0xff] %vm487_vm2, %v897_v40  ;;  %1674 = vmatmul.mubr.msk.f32.vlgmr.msra.gmra.mrb[10].mxu0 %vm487_vm2, %v897_v40 }
 0xb1f   : > { %1751 = vmatpush3.bf16.msra.mxu0 %v2085_v9  ;;  %1695 = vmatprep.mubr.msk.f32.mxu0 %vm1972_vm0, %v1973_v1 }
 0xb20   : > { %1752 = vmatprep.subr.bf16.mxu0 %v1971_v0 }
 0xb23   : > { %1754 = vmatpush3.bf16.msra.mxu0 %v2089_v11 }
 0xbf1   : > { %v969_v42 = vpop.f32.mrb[10].mxu0 }
 0xbf2   : > { %v973_v43 = vadd.f32 %v969_v42, %v456_v41  ;;  %v1675_v44 = vpop.f32.mrb[11].mxu0 }
 0xbf4   : > { %1843 = vtanh.f32 %v973_v43  ;;  %v1538_v46 = vmul.f32 -1.442695, %v973_v43 }
 0xbf6   : > { %1845 = vpow2.f32 %v1538_v46 }
 0xbfe   : > { %v1844_v45 = vpop.eup %1843 }
 0xbff   : > { %983 = vrot.lane.b32.xlu0 %v1844_v45, %s1974_s11 }
 0xc00   : > { %v1846_v47 = vpop.eup %1845 }
 0xc01   : > { %v977_v48 = vadd.f32 1.0, %v1846_v47 }
 0xc03   : > { %1847 = vrcp.f32 %v977_v48 }
 0xc0d   : > { %v1848_v49 = vpop.eup %1847 }
 0xc0e   : > { %v981_v52 = vmul.f32 %v1848_v49, %v888_v36 }
 0xc71   : > { %v984_v50 = vpop.permute.xlu0 %983 }
 0xc72   : > { %v986_v51 = vmul.f32 %v1848_v49, %v984_v50 }
 0xc74   : > { %988 = vrot.lane.b32.xlu1 %v986_v51, %s1975_s12 }
 0xce6   : > { %v989_v53 = vpop.permute.xlu1 %988 }
 0xce7   : > { %v991_v54 = vadd.f32 %v989_v53, %v981_v52 }
 0xce9   : > { %1849 = vtanh.f32 %v991_v54 }
 0xcf3   : > { %v1850_v55 = vpop.eup %1849 }
 0xcf4   : > { %994 = vrot.lane.b32.xlu0 %v1850_v55, %s1974_s11 }
 0xd66   : > { %v995_v56 = vpop.permute.xlu0 %994 }
 0xd67   : > { %v997_v57 = vmul.f32 %v1848_v49, %v995_v56 }
 0xd69   : > { %999 = vrot.lane.b32.xlu1 %v997_v57, %s1975_s12 }
 0xddb   : > { %v1000_v58 = vpop.permute.xlu1 %999 }
 0xddc   : > { %1002 = vst.msk [vmem:[%s2125_s15 + $0x20] sm:$0xff] %vm487_vm2, %v1000_v58  ;;  %1685 = vmatmul.mubr.msk.f32.vlgmr.msra.gmra.mrb[6].mxu1 %vm487_vm2, %v1000_v58 }
 0xddd   : > { %1757 = vmatpush3.bf16.msra.mxu1 %v2085_v9  ;;  %1706 = vmatprep.mubr.msk.f32.mxu1 %vm1972_vm0, %v1973_v1 }
 0xdde   : > { %1758 = vmatprep.subr.bf16.mxu1 %v1971_v0 }
 0xde1   : > { %1760 = vmatpush3.bf16.msra.mxu1 %v2089_v11 }
 0xeaf   : > { %v1072_v63 = vpop.f32.mrb[6].mxu1 }
 0xeb0   : > { %v1076_v2 = vadd.f32 %v1072_v63, %v461_v60  ;;  %v1686_v3 = vpop.f32.mrb[7].mxu1 }
 0xeb2   : > { %1851 = vtanh.f32 %v1076_v2  ;;  %v1540_v5 = vmul.f32 -1.442695, %v1076_v2 }
 0xeb4   : > { %1853 = vpow2.f32 %v1540_v5 }
 0xebc   : > { %v1852_v4 = vpop.eup %1851 }
 0xebd   : > { %1086 = vrot.lane.b32.xlu0 %v1852_v4, %s1974_s11 }
 0xebe   : > { %v1854_v9 = vpop.eup %1853 }
 0xebf   : > { %v1080_v6 = vadd.f32 1.0, %v1854_v9 }
 0xec1   : > { %1855 = vrcp.f32 %v1080_v6 }
 0xecb   : > { %v1856_v1 = vpop.eup %1855 }
 0xecc   : > { %v1084_v11 = vmul.f32 %v1856_v1, %v991_v54 }
 0xf2f   : > { %v1087_v0 = vpop.permute.xlu0 %1086 }
 0xf30   : > { %v1089_v7 = vmul.f32 %v1856_v1, %v1087_v0 }
 0xf32   : > { %1091 = vrot.lane.b32.xlu1 %v1089_v7, %s1975_s12 }
 0xfa4   : > { %v1092_v59 = vpop.permute.xlu1 %1091 }
 0xfa5   : > { %v1094_v8 = vadd.f32 %v1092_v59, %v1084_v11 }
 0xfa7   : > { %1857 = vtanh.f32 %v1094_v8 }
 0xfb1   : > { %v1858_v10 = vpop.eup %1857 }
 0xfb2   : > { %1097 = vrot.lane.b32.xlu0 %v1858_v10, %s1974_s11 }
0x1024   : > { %v1098_v12 = vpop.permute.xlu0 %1097 }
0x1025   : > { %v1100_v14 = vmul.f32 %v1856_v1, %v1098_v12 }
0x1027   : > { %1102 = vrot.lane.b32.xlu1 %v1100_v14, %s1975_s12 }
0x1099   : > { %v1103_v15 = vpop.permute.xlu1 %1102 }
0x109a   : > { %1105 = vst.msk [vmem:[%s2125_s15 + $0x28] sm:$0xff] %vm487_vm2, %v1103_v15  ;;  %1696 = vmatmul.mubr.msk.f32.vlgmr.msra.gmra.mrb[12].mxu0 %vm487_vm2, %v1103_v15 }
0x116d   : > { %v1175_v17 = vpop.f32.mrb[12].mxu0 }
0x116e   : > { %v1179_v18 = vadd.f32 %v1175_v17, %v466_v16  ;;  %v1697_v19 = vpop.f32.mrb[13].mxu0 }
0x1170   : > { %1859 = vtanh.f32 %v1179_v18  ;;  %v1542_v21 = vmul.f32 -1.442695, %v1179_v18 }
0x1172   : > { %1861 = vpow2.f32 %v1542_v21 }
0x117a   : > { %v1860_v20 = vpop.eup %1859 }
0x117b   : > { %1189 = vrot.lane.b32.xlu0 %v1860_v20, %s1974_s11 }
0x117c   : > { %v1862_v22 = vpop.eup %1861 }
0x117d   : > { %v1183_v23 = vadd.f32 1.0, %v1862_v22 }
0x117f   : > { %1863 = vrcp.f32 %v1183_v23 }
0x1189   : > { %v1864_v24 = vpop.eup %1863 }
0x118a   : > { %v1187_v27 = vmul.f32 %v1864_v24, %v1094_v8 }
0x11ed   : > { %v1190_v25 = vpop.permute.xlu0 %1189 }
0x11ee   : > { %v1192_v26 = vmul.f32 %v1864_v24, %v1190_v25 }
0x11f0   : > { %1194 = vrot.lane.b32.xlu1 %v1192_v26, %s1975_s12 }
0x1262   : > { %v1195_v62 = vpop.permute.xlu1 %1194 }
0x1263   : > { %v1197_v28 = vadd.f32 %v1195_v62, %v1187_v27 }
0x1265   : > { %1865 = vtanh.f32 %v1197_v28 }
0x126f   : > { %v1866_v29 = vpop.eup %1865 }
0x1270   : > { %1200 = vrot.lane.b32.xlu0 %v1866_v29, %s1974_s11 }
0x12e2   : > { %v1201_v30 = vpop.permute.xlu0 %1200 }
0x12e3   : > { %v1203_v31 = vmul.f32 %v1864_v24, %v1201_v30 }
0x12e5   : > { %1205 = vrot.lane.b32.xlu1 %v1203_v31, %s1975_s12 }
0x1357   : > { %v1206_v32 = vpop.permute.xlu1 %1205 }
0x1358   : > { %1208 = vst.msk [vmem:[%s2125_s15 + $0x30] sm:$0xff] %vm487_vm2, %v1206_v32  ;;  %1707 = vmatmul.mubr.msk.f32.vlgmr.msra.gmra.mrb[8].mxu1 %vm487_vm2, %v1206_v32 }
0x142b   : > { %v1278_v34 = vpop.f32.mrb[8].mxu1 }
0x142c   : > { %v1282_v35 = vadd.f32 %v1278_v34, %v471_v33  ;;  %v1708_v36 = vpop.f32.mrb[9].mxu1 }
0x142e   : > { %1867 = vtanh.f32 %v1282_v35  ;;  %v1544_v38 = vmul.f32 -1.442695, %v1282_v35 }
0x1430   : > { %1869 = vpow2.f32 %v1544_v38 }
0x1438   : > { %v1868_v37 = vpop.eup %1867 }
0x1439   : > { %1292 = vrot.lane.b32.xlu0 %v1868_v37, %s1974_s11 }
0x143a   : > { %v1870_v39 = vpop.eup %1869 }
0x143b   : > { %v1286_v40 = vadd.f32 1.0, %v1870_v39 }
0x143d   : > { %1871 = vrcp.f32 %v1286_v40 }
0x1447   : > { %v1872_v41 = vpop.eup %1871 }
0x1448   : > { %v1290_v13 = vmul.f32 %v1872_v41, %v1197_v28 }
0x14ab   : > { %v1293_v42 = vpop.permute.xlu0 %1292 }
0x14ac   : > { %v1295_v43 = vmul.f32 %v1872_v41, %v1293_v42 }
0x14ae   : > { %1297 = vrot.lane.b32.xlu1 %v1295_v43, %s1975_s12 }
0x1520   : > { %v1298_v61 = vpop.permute.xlu1 %1297 }
0x1521   : > { %v1300_v44 = vadd.f32 %v1298_v61, %v1290_v13 }
0x1523   : > { %1873 = vtanh.f32 %v1300_v44 }
0x152d   : > { %v1874_v45 = vpop.eup %1873 }
0x152e   : > { %1303 = vrot.lane.b32.xlu0 %v1874_v45, %s1974_s11  ;;  %s1875_s11 = scalar_lea.vmem %s2251_s20, 128 }
0x152f   : > { %p1876_p11 = scmp.ne.s32.totalorder %s2251_s20, %s1875_s11 }
0x1531   : > { %p1877_p12 = pnand %p1876_p11, %p2052_p5 }
0x1532   : > { %1314 = vrot.lane.b32.xlu0 %v1300_v44, %s1976_s9 }
0x1533   : > { %p1878_p13 = pneg %p1877_p12 }
0x15a0   : > { %v1304_v46 = vpop.permute.xlu0 %1303 }
0x15a1   : > { %v1306_v47 = vmul.f32 %v1872_v41, %v1304_v46 }
0x15a3   : > { %1308 = vrot.lane.b32.xlu1 %v1306_v47, %s1975_s12  ;;  %s1977_s12 = smov [#allocation5]  }
0x15a4   : > { %v1315_v48 = vpop.permute.xlu0 %1314  ;;  %s1879_s13 = sshll.u32 %s1977_s12, 4  ;;  %s1880_s13 = int_to_ptr.vmem [resolvable:$false] %s1879_s13 }
0x15a5   : > { %1317 = vst.msk [vmem:[%s303_s19] sm:$0xff] %vm487_vm2, %v1315_v48  ;;  %s1881_s14 = scalar_lea.vmem %s1880_s13, 256  ;;  %p1882_p0 = scmp.lt.s32.totalorder %s2251_s20, %s1880_s13 }
0x15a6   : > { %p1883_p1 = scmp.lt.s32.totalorder %s1881_s14, %s1875_s11 }
0x15a8   : > { %p1884_p2 = por %p1883_p1, %p1882_p0 }
0x15aa   : > { %p1885_p3 = pnand %p1884_p2, %p1878_p13 }
0x15ac   : > { %1888 = shalt.err (!%p1885_p3)
}
0x15ad   : > { %s1889_s9 = scalar_lea.hbm %s2249_s29, 128  ;;  %s1893_s28 = scalar_lea.hbm %s2335_s6, 256 }
0x15ae   : > { %p1890_p4 = scmp.ne.s32.totalorder %s2249_s29, %s1889_s9  ;;  %p1894_p9 = scmp.lt.u32.totalorder %s2249_s29, %s2335_s6 }
0x15af   : > { %p1895_p10 = scmp.lt.u32.totalorder %s1893_s28, %s1889_s9  ;;  %p1897_p12 = scmp.lt.u32.totalorder %s1889_s9, %s2249_s29 }
0x15b0   : > { %p1891_p7 = pnand %p1890_p4, %p2052_p5 }
0x15b1   : > { %p1896_p11 = por %p1895_p10, %p1894_p9 }
0x15b2   : > { %p1892_p8 = pneg %p1891_p7 }
0x15b3   : > { %p1898_p13 = por %p1897_p12, %p1896_p11 }
0x15b5   : > { %p1899_p0 = pnand %p1898_p13, %p1892_p8 }
0x15b7   : > { %1902 = shalt.err (!%p1899_p0)
}
0x15b8   : > { %1762 = dma.vmem_to_hbm [thread:$0]  (%p2052_p5), %s2251_s20, 128, %s2249_s29, %s1329_s10  }
0x15b9   : > { %s296_s11 = scalar_lea.vmem [#allocation3], %s1511_s17  ;;  %s2283_s9 = scalar_lea.hbm %s2334_s5, %s1547_s18 }
0x15ba   : > { %s1345_s14 = sshll.u32 %s296_s11, 4  ;;  %s1324_s20 = scalar_lea.sflag [#allocation4], %s2237_s16  ;;  %s2285_s14 = int_to_ptr.vmem [resolvable:$true] %s1345_s14 }
0x15bb   : > { %s1903_s29 = scalar_lea.vmem %s2285_s14, 128  ;;  %s1978_s25 = smov [#allocation3]  }
0x15bc   : > { %p1904_p1 = scmp.ne.s32.totalorder %s2285_s14, %s1903_s29  ;;  %s1907_s17 = sshll.u32 %s1978_s25, 4  ;;  %s1908_s17 = int_to_ptr.vmem [resolvable:$false] %s1907_s17 }
0x15bd   : > { %s1909_s18 = scalar_lea.vmem %s1908_s17, 256  ;;  %p1910_p4 = scmp.lt.s32.totalorder %s2285_s14, %s1908_s17 }
0x15be   : > { %p1905_p2 = pnand %p1904_p1, %p2052_p5  ;;  %p1911_p7 = scmp.lt.s32.totalorder %s1909_s18, %s1903_s29 }
0x15c0   : > { %p1906_p3 = pneg %p1905_p2  ;;  %p1912_p8 = por %p1911_p7, %p1910_p4 }
0x15c2   : > { %p1913_p9 = pnand %p1912_p8, %p1906_p3 }
0x1615   : > { %v1309_v49 = vpop.permute.xlu1 %1308 }
0x1616   : > { %1311 = vst.msk [vmem:[%s2125_s15 + $0x38] sm:$0xff] %vm487_vm2, %v1309_v49  ;;  %1312 = vst.msk [vmem:[%s296_s11] sm:$0xff] %vm487_vm2, %v1309_v49 }
0x1617   : > { %1916 = shalt.err (!%p1913_p9)
}
0x1618   : > { %s1917_s15 = scalar_lea.hbm %s2283_s9, 128  ;;  %s1921_s28 = scalar_lea.hbm %s2334_s5, 256 }
0x1619   : > { %p1918_p10 = scmp.ne.s32.totalorder %s2283_s9, %s1917_s15  ;;  %p1922_p13 = scmp.lt.u32.totalorder %s2283_s9, %s2334_s5 }
0x161a   : > { %p1923_p0 = scmp.lt.u32.totalorder %s1921_s28, %s1917_s15  ;;  %p1925_p2 = scmp.lt.u32.totalorder %s1917_s15, %s2283_s9 }
0x161b   : > { %p1919_p11 = pnand %p1918_p10, %p2052_p5 }
0x161c   : > { %p1924_p1 = por %p1923_p0, %p1922_p13 }
0x161d   : > { %p1920_p12 = pneg %p1919_p11 }
0x161e   : > { %p1926_p3 = por %p1925_p2, %p1924_p1 }
0x1620   : > { %p1927_p4 = pnand %p1926_p3, %p1920_p12 }
0x1622   : > { %1930 = shalt.err (!%p1927_p4)
}
0x1623   : > { %1761 = dma.vmem_to_hbm [thread:$0]  (%p2052_p5), %s2285_s14, 128, %s2283_s9, %s1324_s20  }
0x1624 PF: > { %p1772_p7 = scmp.ge.s32.totalorder %s1969_s24, 2  ;;  %s1378_s11 = sand.u32 1, %s1957_s21  }
0x1625   : > { %s1379_s19 = scalar_lea.sflag [#allocation4], %s1378_s11 }
0x1626   : > { %p1766_p8 = pnand %p1772_p7, %p2056_p6 }
0x1628   : > { %1948 = dma.done.wait (!%p1766_p8), %s1379_s19, 128  }
0x1629   : > { %1950 = vsyncadd (!%p1766_p8), %s1379_s19, 4294967168  ;;  %s1388_s26 = scalar_lea.sflag [#allocation6], %s1378_s11 }
0x162a   : > { %1952 = dma.done.wait (!%p1766_p8), %s1388_s26, 128  }
0x162b   : > { %1954 = vsyncadd (!%p1766_p8), %s1388_s26, 4294967168  ;;  %p20_p5 = scmp.ge.s32.totalorder %s2039_s27, 4   ;;  %s2338_s21 = smov %s1961_s22 }
0x162c   : > { %s2339_s22 = smov %s1965_s23  ;;  %s2340_s23 = smov %s2050_s30 }
0x162d   : > { %s2341_s24 = smov %s2039_s27  ;;  %22 = sbr.rel (!%p20_p5) target bundleno = 5 (0x5), region = 109 }
0x1634   :  { %1393 = vsyncpa [#allocation4], 1 }
0x1635   :  { %1395 = vsyncpa [#allocation4 + $0x1], 1 }
0x1636   :  { %1396 = vsyncpa [#allocation6], 1 }
0x1637   :  { %1398 = vsyncpa [#allocation6 + $0x1], 1 }

</bundles_post_ra>
